<compile_context>
chip_gen: v6e
topology: v6e:2x2x1
jax: 0.10.0
libtpu: 0.0.40
codegen_flags: <defaults>
</compile_context>

<pallas_src>
import functools
import math

import jax
import jax.numpy as jnp
from jax.experimental import pallas as pl
from jax.experimental.pallas import tpu as pltpu


_PARALLEL1 = pltpu.CompilerParams(dimension_semantics=("parallel",))


def _pick_tile(n, row_bytes, budget=2 * 1024 * 1024, cap=512):
    """Largest tile t dividing n with t*row_bytes <= budget; t is either the whole
    axis or a multiple of 8 (sublane-friendly second-to-last block dim)."""
    hi = min(n, cap, max(8, budget // max(row_bytes, 1)))
    if hi >= n:
        return n
    for t in range(hi, 7, -1):
        if n % t == 0 and t % 8 == 0:
            return t
    return n  # fallback: single block


# ----------------------------------------------------------------------------
# Kernel 1: fused embedding matmul * sqrt(d_model) + positional-encoding add
#           (+ fused PE-dropout mask multiply)
# ----------------------------------------------------------------------------
def _embed_pe_kernel(x_ref, w_ref, b_ref, pe_ref, *rest, scale, has_drop):
    if has_drop:
        drop_ref, o_ref = rest
    else:
        (o_ref,) = rest
    ts, s1, d_in = x_ref.shape
    d_model = w_ref.shape[1]
    x2 = x_ref[...].reshape(ts * s1, d_in)
    y = jnp.dot(x2, w_ref[...], preferred_element_type=jnp.float32)
    y = (y + b_ref[...]) * scale                       # embedding(x) * sqrt(d_model)
    y = y.reshape(ts, s1, d_model) + pe_ref[...]       # + pe[:dim0], broadcast over dim 1
    if has_drop:
        y = y * drop_ref[...]                          # pre-scaled dropout keep-mask
    o_ref[...] = y.astype(o_ref.dtype)


def embed_scale_pe(x, w_emb, b_emb, pe, drop_mask=None):
    s0, s1, d_in = x.shape
    d_model = w_emb.shape[1]
    scale = math.sqrt(d_model)
    ts = _pick_tile(s0, row_bytes=4 * s1 * (d_in + 2 * d_model))
    grid = (s0 // ts,)

    in_specs = [
        pl.BlockSpec((ts, s1, d_in), lambda i: (i, 0, 0)),
        pl.BlockSpec((d_in, d_model), lambda i: (0, 0)),
        pl.BlockSpec((1, d_model), lambda i: (0, 0)),
        # full PE buffer is passed; the index_map picks the needed rows (no HBM copy)
        pl.BlockSpec((ts, 1, d_model), lambda i: (i, 0, 0)),
    ]
    args = [x, w_emb, b_emb.reshape(1, d_model), pe]
    if drop_mask is not None:
        in_specs.append(pl.BlockSpec((ts, s1, d_model), lambda i: (i, 0, 0)))
        args.append(drop_mask)

    kernel = functools.partial(_embed_pe_kernel, scale=scale,
                               has_drop=drop_mask is not None)
    return pl.pallas_call(
        kernel,
        out_shape=jax.ShapeDtypeStruct((s0, s1, d_model), x.dtype),
        grid=grid,
        in_specs=in_specs,
        out_specs=pl.BlockSpec((ts, s1, d_model), lambda i: (i, 0, 0)),
        compiler_params=_PARALLEL1,
    )(*args)


# ----------------------------------------------------------------------------
# Kernel 2: generic fused matmul + bias (+ optional ReLU), token-major 2-D slabs
# ----------------------------------------------------------------------------
def _linear_kernel(x_ref, w_ref, b_ref, o_ref, *, relu):
    y = jnp.dot(x_ref[...], w_ref[...], preferred_element_type=jnp.float32)
    y = y + b_ref[...]
    if relu:
        y = jnp.maximum(y, 0.0)
    o_ref[...] = y.astype(o_ref.dtype)


def linear(x, w, b, relu=False):
    n, d_in = x.shape
    d_out = w.shape[1]
    tn = _pick_tile(n, row_bytes=4 * (d_in + d_out))
    return pl.pallas_call(
        functools.partial(_linear_kernel, relu=relu),
        out_shape=jax.ShapeDtypeStruct((n, d_out), x.dtype),
        grid=(n // tn,),
        in_specs=[
            pl.BlockSpec((tn, d_in), lambda i: (i, 0)),
            pl.BlockSpec((d_in, d_out), lambda i: (0, 0)),
            pl.BlockSpec((1, d_out), lambda i: (0, 0)),
        ],
        out_specs=pl.BlockSpec((tn, d_out), lambda i: (i, 0)),
        compiler_params=_PARALLEL1,
    )(x, w, b.reshape(1, d_out))


# ----------------------------------------------------------------------------
# Kernel 3: per-(batch, head) scaled-dot-product attention with additive causal
#           mask (+ optional fused attention-weight dropout mask)
# ----------------------------------------------------------------------------
def _attn_kernel(q_ref, k_ref, v_ref, m_ref, *rest, scale, has_drop):
    if has_drop:
        d_ref, o_ref = rest
    else:
        (o_ref,) = rest
    q = q_ref[0]                                       # (L, hd)
    k = k_ref[0]
    v = v_ref[0]
    s = jax.lax.dot_general(q, k, (((1,), (1,)), ((), ())),
                            preferred_element_type=jnp.float32) * scale
    s = s + m_ref[...]                                 # additive causal mask (L, L)
    s = s - jnp.max(s, axis=-1, keepdims=True)
    p = jnp.exp(s)
    p = p / jnp.sum(p, axis=-1, keepdims=True)
    if has_drop:
        p = p * d_ref[0]                               # attention-weight dropout
    ctx = jnp.dot(p.astype(v.dtype), v, preferred_element_type=jnp.float32)
    o_ref[...] = ctx[None].astype(o_ref.dtype)


def attention(q, k, v, attn_mask, attn_drop=None):
    # TODO(synk): for long sequences this should be a flash-style kernel tiled over
    # KV with an online softmax; at these sizes the full (L, L) scores fit in VMEM.
    bh, L, hd = q.shape
    scale = 1.0 / math.sqrt(hd)
    in_specs = [
        pl.BlockSpec((1, L, hd), lambda i: (i, 0, 0)),
        pl.BlockSpec((1, L, hd), lambda i: (i, 0, 0)),
        pl.BlockSpec((1, L, hd), lambda i: (i, 0, 0)),
        pl.BlockSpec((L, L), lambda i: (0, 0)),
    ]
    args = [q, k, v, attn_mask]
    if attn_drop is not None:
        in_specs.append(pl.BlockSpec((1, L, L), lambda i: (i, 0, 0)))
        args.append(attn_drop)
    return pl.pallas_call(
        functools.partial(_attn_kernel, scale=scale, has_drop=attn_drop is not None),
        out_shape=jax.ShapeDtypeStruct((bh, L, hd), q.dtype),
        grid=(bh,),
        in_specs=in_specs,
        out_specs=pl.BlockSpec((1, L, hd), lambda i: (i, 0, 0)),
        compiler_params=_PARALLEL1,
    )(*args)


# ----------------------------------------------------------------------------
# Kernel 4: fused residual add + LayerNorm (torch eps=1e-5)
# ----------------------------------------------------------------------------
def _add_ln_kernel(x_ref, y_ref, g_ref, b_ref, o_ref, *, eps):
    h = x_ref[...] + y_ref[...]
    mu = jnp.mean(h, axis=-1, keepdims=True)
    var = jnp.mean(jnp.square(h - mu), axis=-1, keepdims=True)
    inv = jax.lax.rsqrt(var + eps)
    o_ref[...] = ((h - mu) * inv * g_ref[...] + b_ref[...]).astype(o_ref.dtype)


def add_layernorm(x, y, gamma, beta, eps=1e-5):
    n, d = x.shape
    tn = _pick_tile(n, row_bytes=4 * 3 * d)
    return pl.pallas_call(
        functools.partial(_add_ln_kernel, eps=eps),
        out_shape=jax.ShapeDtypeStruct((n, d), x.dtype),
        grid=(n // tn,),
        in_specs=[
            pl.BlockSpec((tn, d), lambda i: (i, 0)),
            pl.BlockSpec((tn, d), lambda i: (i, 0)),
            pl.BlockSpec((1, d), lambda i: (0, 0)),
            pl.BlockSpec((1, d), lambda i: (0, 0)),
        ],
        out_specs=pl.BlockSpec((tn, d), lambda i: (i, 0)),
        compiler_params=_PARALLEL1,
        # input_output_aliases={1: 0} could reuse y's HBM buffer once it is dead.
    )(x, y, gamma.reshape(1, d), beta.reshape(1, d))


# ----------------------------------------------------------------------------
# Glue: PE table, causal mask, dropout keep-masks, parameter init
# ----------------------------------------------------------------------------
def make_sinusoidal_pe(max_len, d_model, dtype=jnp.float32):
    position = jnp.arange(max_len, dtype=jnp.float32)[:, None]
    div_term = jnp.exp(jnp.arange(0, d_model, 2, dtype=jnp.float32)
                       * (-math.log(10000.0) / d_model))
    pe = jnp.zeros((max_len, d_model), jnp.float32)
    pe = pe.at[:, 0::2].set(jnp.sin(position * div_term))
    pe = pe.at[:, 1::2].set(jnp.cos(position * div_term))
    return pe[:, None, :].astype(dtype)                # (max_len, 1, d_model), as in torch


def causal_mask(sz, dtype=jnp.float32):
    i = jnp.arange(sz)[:, None]
    j = jnp.arange(sz)[None, :]
    return jnp.where(j <= i, 0.0, -jnp.inf).astype(dtype)


def _keep_mask(key, shape, p, dtype):
    keep = jax.random.bernoulli(key, 1.0 - p, shape)
    return keep.astype(dtype) / (1.0 - p)


def init_params(key, d_in, d_model, nhead, n_layers, dim_feedforward, max_len=5000):
    assert d_model % nhead == 0
    keys = jax.random.split(key, 1 + 4 * n_layers)

    def dense(k, fan_in, fan_out):
        lim = 1.0 / math.sqrt(fan_in)
        return jax.random.uniform(k, (fan_in, fan_out), jnp.float32, -lim, lim)

    params = {
        "w_emb": dense(keys[0], d_in, d_model),
        "b_emb": jnp.zeros((d_model,), jnp.float32),
        "pe": make_sinusoidal_pe(max_len, d_model),
        "layers": [],
    }
    for li in range(n_layers):
        k = keys[1 + 4 * li: 1 + 4 * (li + 1)]
        params["layers"].append({
            "w_qkv": dense(k[0], d_model, 3 * d_model),
            "b_qkv": jnp.zeros((3 * d_model,), jnp.float32),
            "w_o": dense(k[1], d_model, d_model),
            "b_o": jnp.zeros((d_model,), jnp.float32),
            "ln1_g": jnp.ones((d_model,), jnp.float32),
            "ln1_b": jnp.zeros((d_model,), jnp.float32),
            "w_ff1": dense(k[2], d_model, dim_feedforward),
            "b_ff1": jnp.zeros((dim_feedforward,), jnp.float32),
            "w_ff2": dense(k[3], dim_feedforward, d_model),
            "b_ff2": jnp.zeros((d_model,), jnp.float32),
            "ln2_g": jnp.ones((d_model,), jnp.float32),
            "ln2_b": jnp.zeros((d_model,), jnp.float32),
        })
    return params


# ----------------------------------------------------------------------------
# Model forward (mirrors TransformerModel.forward / TransformerEncoderLayer)
# ----------------------------------------------------------------------------
def encoder_layer(src, p, attn_mask, nhead, p_drop, train_keys):
    L, B, D = src.shape
    hd = D // nhead
    n = L * B
    x2 = src.reshape(n, D)

    qkv = linear(x2, p["w_qkv"], p["b_qkv"])                     # (n, 3D)
    qkv = qkv.reshape(L, B, 3, nhead, hd)
    qkv = jnp.transpose(qkv, (2, 1, 3, 0, 4))                    # (3, B, H, L, hd)
    q = qkv[0].reshape(B * nhead, L, hd)
    k = qkv[1].reshape(B * nhead, L, hd)
    v = qkv[2].reshape(B * nhead, L, hd)

    attn_drop = None
    if train_keys is not None:
        attn_drop = _keep_mask(train_keys[0], (B * nhead, L, L), p_drop, src.dtype)
    ctx = attention(q, k, v, attn_mask, attn_drop)               # (B*H, L, hd)
    ctx = jnp.transpose(ctx.reshape(B, nhead, L, hd), (2, 0, 1, 3)).reshape(n, D)

    attn_out = linear(ctx, p["w_o"], p["b_o"])
    if train_keys is not None:
        attn_out = attn_out * _keep_mask(train_keys[1], attn_out.shape, p_drop, src.dtype)
    h = add_layernorm(x2, attn_out, p["ln1_g"], p["ln1_b"])      # norm1(x + sa_block(x))

    ff = linear(h, p["w_ff1"], p["b_ff1"], relu=True)
    if train_keys is not None:
        ff = ff * _keep_mask(train_keys[2], ff.shape, p_drop, src.dtype)
    ff = linear(ff, p["w_ff2"], p["b_ff2"])
    if train_keys is not None:
        ff = ff * _keep_mask(train_keys[3], ff.shape, p_drop, src.dtype)
    out = add_layernorm(h, ff, p["ln2_g"], p["ln2_b"])           # norm2(x + ff_block(x))
    return out.reshape(L, B, D)


def transformer_forward(params, x, x_len=None, *, nhead, dropout=0.1,
                        training=False, rng=None):
    """x: (dim0, dim1, d_in).  Exactly like the torch module: PE is added along
    dim0 (broadcast over dim1), then permute(1,0,2) makes dim1 the attention axis
    with a causal mask.  `x_len` is accepted but unused (as in the reference)."""
    del x_len
    s0, s1, _ = x.shape
    d_model = params["w_emb"].shape[1]
    n_layers = len(params["layers"])

    drop_keys = None
    if training and dropout > 0.0:
        if rng is None:
            rng = jax.random.PRNGKey(0)
        drop_keys = jax.random.split(rng, 1 + 4 * n_layers)

    pe_mask = None
    if drop_keys is not None:
        pe_mask = _keep_mask(drop_keys[0], (s0, s1, d_model), dropout, x.dtype)

    h = embed_scale_pe(x, params["w_emb"], params["b_emb"],
                       params["pe"].astype(x.dtype), pe_mask)    # (s0, s1, D)

    h = jnp.transpose(h, (1, 0, 2))                              # permute(1, 0, 2)
    mask = causal_mask(h.shape[0], h.dtype)
    for li, layer in enumerate(params["layers"]):
        keys = None if drop_keys is None else drop_keys[1 + 4 * li: 1 + 4 * (li + 1)]
        h = encoder_layer(h, layer, mask, nhead, dropout, keys)

    return jnp.transpose(h, (1, 0, 2))                           # permute back


if __name__ == "__main__":
    # Small shapes consistent with the module.
    d_in, d_model, nhead, n_layers, d_ff = 16, 32, 4, 2, 64
    batch, seq = 2, 8                                   # x: (batch, seq, d_in)
    p_drop = 0.1

    key = jax.random.PRNGKey(0)
    kp, kx, kd = jax.random.split(key, 3)
    params = init_params(kp, d_in, d_model, nhead, n_layers, d_ff)
    x = jax.random.normal(kx, (batch, seq, d_in), jnp.float32)
    x_len = jnp.full((batch,), seq, jnp.int32)

    # Training-mode pass (dropout active, as a fresh nn.Module would be).
    out = transformer_forward(params, x, x_len, nhead=nhead, dropout=p_drop,
                              training=True, rng=kd)
    out = jax.block_until_ready(out)
    assert out.shape == (batch, seq, d_model)
    assert bool(jnp.all(jnp.isfinite(out)))

    # Deterministic eval-mode pass as a sanity check.
    out_eval = jax.block_until_ready(
        transformer_forward(params, x, x_len, nhead=nhead, dropout=p_drop,
                            training=False))
    assert out_eval.shape == (batch, seq, d_model)
    assert bool(jnp.all(jnp.isfinite(out_eval)))

    print("KERNEL_OK")
</pallas_src>

<mosaic_0001>
module attributes {stable_mosaic.version = 11 : i64} {
  func.func @_embed_pe_kernel(%arg0: i32, %arg1: memref<2x8x16xf32, #tpu.memory_space<vmem>>, %arg2: memref<16x32xf32, #tpu.memory_space<vmem>>, %arg3: memref<1x32xf32, #tpu.memory_space<vmem>>, %arg4: memref<2x1x32xf32, #tpu.memory_space<vmem>>, %arg5: memref<2x8x32xf32, #tpu.memory_space<vmem>>, %arg6: memref<2x8x32xf32, #tpu.memory_space<vmem>>) attributes {dimension_semantics = [#tpu.dimension_semantics<parallel>], iteration_bounds = array<i64: 1>, scalar_prefetch = 0 : i64, scratch_operands = 0 : i64, tpu.core_type = #tpu.core_type<tc>, window_params = [{transform_indices = @transform_0, window_bounds = array<i64: 2, 8, 16>}, {pipeline_mode = #tpu.pipeline_mode<synchronous>, transform_indices = @transform_1, window_bounds = array<i64: 16, 32>}, {pipeline_mode = #tpu.pipeline_mode<synchronous>, transform_indices = @transform_2, window_bounds = array<i64: 1, 32>}, {transform_indices = @transform_3, window_bounds = array<i64: 2, 1, 32>}, {transform_indices = @transform_4, window_bounds = array<i64: 2, 8, 32>}, {transform_indices = @transform_5, window_bounds = array<i64: 2, 8, 32>}]} {
    %c0 = arith.constant 0 : index
    %c0_0 = arith.constant 0 : index
    %c0_1 = arith.constant 0 : index
    %0 = vector.load %arg1[%c0, %c0_0, %c0_1] : memref<2x8x16xf32, #tpu.memory_space<vmem>>, vector<2x8x16xf32>
    %1 = vector.shape_cast %0 : vector<2x8x16xf32> to vector<16x16xf32>
    %c0_2 = arith.constant 0 : index
    %c0_3 = arith.constant 0 : index
    %2 = vector.load %arg2[%c0_2, %c0_3] : memref<16x32xf32, #tpu.memory_space<vmem>>, vector<16x32xf32>
    %cst = arith.constant dense<0.000000e+00> : vector<16x32xf32>
    %3 = tpu.matmul %1, %2, %cst {dimension_numbers = #tpu.dot_dimension_numbers<[1], [0], [0], [1], [0, 0, 1, 1], [], []>} : vector<16x16xf32>, vector<16x32xf32>, vector<16x32xf32> -> vector<16x32xf32>
    %c0_4 = arith.constant 0 : index
    %c0_5 = arith.constant 0 : index
    %4 = vector.load %arg3[%c0_4, %c0_5] : memref<1x32xf32, #tpu.memory_space<vmem>>, vector<1x32xf32>
    %5 = vector.broadcast %4 : vector<1x32xf32> to vector<16x32xf32>
    %6 = arith.addf %3, %5 : vector<16x32xf32>
    %cst_6 = arith.constant 5.65685415 : f32
    %7 = vector.broadcast %cst_6 : f32 to vector<16x32xf32>
    %8 = arith.mulf %6, %7 : vector<16x32xf32>
    %9 = vector.shape_cast %8 : vector<16x32xf32> to vector<2x8x32xf32>
    %c0_7 = arith.constant 0 : index
    %c0_8 = arith.constant 0 : index
    %c0_9 = arith.constant 0 : index
    %10 = vector.load %arg4[%c0_7, %c0_8, %c0_9] : memref<2x1x32xf32, #tpu.memory_space<vmem>>, vector<2x1x32xf32>
    %11 = vector.broadcast %10 : vector<2x1x32xf32> to vector<2x8x32xf32>
    %12 = arith.addf %9, %11 : vector<2x8x32xf32>
    %c0_10 = arith.constant 0 : index
    %c0_11 = arith.constant 0 : index
    %c0_12 = arith.constant 0 : index
    %13 = vector.load %arg5[%c0_10, %c0_11, %c0_12] : memref<2x8x32xf32, #tpu.memory_space<vmem>>, vector<2x8x32xf32>
    %14 = arith.mulf %12, %13 : vector<2x8x32xf32>
    %c0_13 = arith.constant 0 : index
    %c0_14 = arith.constant 0 : index
    %c0_15 = arith.constant 0 : index
    %15 = vector.load %arg6[%c0_13, %c0_14, %c0_15] : memref<2x8x32xf32, #tpu.memory_space<vmem>>, vector<2x8x32xf32>
    tpu.vector_store %arg6[%c0_13, %c0_14, %c0_15], %14 {strides = array<i32>} : memref<2x8x32xf32, #tpu.memory_space<vmem>>, vector<2x8x32xf32>,
    return
  }
  func.func @transform_0(%arg0: i32) -> (i32, i32, i32) {
    %c0_i32 = arith.constant 0 : i32
    %c0_i32_0 = arith.constant 0 : i32
    %c0_i32_1 = arith.constant 0 : i32
    return %arg0, %c0_i32, %c0_i32_0 : i32, i32, i32
  }
  func.func @transform_1(%arg0: i32) -> (i32, i32) {
    %c0_i32 = arith.constant 0 : i32
    %c0_i32_0 = arith.constant 0 : i32
    %c0_i32_1 = arith.constant 0 : i32
    return %c0_i32, %c0_i32_0 : i32, i32
  }
  func.func @transform_2(%arg0: i32) -> (i32, i32) {
    %c0_i32 = arith.constant 0 : i32
    %c0_i32_0 = arith.constant 0 : i32
    %c0_i32_1 = arith.constant 0 : i32
    return %c0_i32, %c0_i32_0 : i32, i32
  }
  func.func @transform_3(%arg0: i32) -> (i32, i32, i32) {
    %c0_i32 = arith.constant 0 : i32
    %c0_i32_0 = arith.constant 0 : i32
    %c0_i32_1 = arith.constant 0 : i32
    return %arg0, %c0_i32, %c0_i32_0 : i32, i32, i32
  }
  func.func @transform_4(%arg0: i32) -> (i32, i32, i32) {
    %c0_i32 = arith.constant 0 : i32
    %c0_i32_0 = arith.constant 0 : i32
    %c0_i32_1 = arith.constant 0 : i32
    return %arg0, %c0_i32, %c0_i32_0 : i32, i32, i32
  }
  func.func @transform_5(%arg0: i32) -> (i32, i32, i32) {
    %c0_i32 = arith.constant 0 : i32
    %c0_i32_0 = arith.constant 0 : i32
    %c0_i32_1 = arith.constant 0 : i32
    return %arg0, %c0_i32, %c0_i32_0 : i32, i32, i32
  }
}

</mosaic_0001>

<bundles_post_ra>
// kernel: tpu_custom_call.1
= control target key start
LH: loop header
LB: loop body
LE: loop exit
PB: predicated region body
PF: predicated region fallthrough
CT: control target
= control target key end

     0   :  { %vm32_vm0 = vcmask 130048   ;;  %s259_s0 = inlined_call_operand.vmem [shape: f32[2,8,16], index: 0, kind: input, shape index: {}]   ;;  %s260_s1 = inlined_call_operand.vmem [shape: f32[16,32], index: 1, kind: input, shape index: {}]   ;;  %s261_s2 = inlined_call_operand.vmem [shape: f32[1,32], index: 2, kind: input, shape index: {}]   ;;  %s262_s3 = inlined_call_operand.vmem [shape: f32[5000,1,32], index: 3, kind: input, shape index: {}]   ;;  %s263_s4 = inlined_call_operand.vmem [shape: f32[2,8,32], index: 4, kind: input, shape index: {}]   ;;  %s264_s5 = inlined_call_operand.hbm [shape: f32[2,8,32], index: 5, kind: output, shape index: {}]  }
   0x1   :  { %v24_v0 = vld [vmem:[%s260_s1 + $0x8] sm:$0xff]  ;;  %v23_v1 = vld [vmem:[%s260_s1] sm:$0xff] }
   0x2   :  { %v21_v2 = vld [vmem:[%s259_s0] sm:$0xff]  ;;  %164 = vmatprep.subr.mxu0 %v24_v0 }
   0x3   :  { %168 = vmatprep.mubr.msk.f32.mxu0 %vm32_vm0, %v21_v2 }
   0x4   :  { %10 = vsyncpa [#allocation3], 0  ;;  %165 = vmatpush3.msra.mxu0 %v24_v0  ;;  %v22_v3 = vld [vmem:[%s259_s0 + $0x8] sm:$0xff]  ;;  %v155_v4 = vld [vmem:[%s261_s2] ss:$0 sm:$0xff]  ;;  %s196_s2 = smov [#allocation2]  }
   0x5   :  { %166 = vmatprep.subr.mxu0 %v23_v1  ;;  %v159_v7 = vld [vmem:[%s262_s3 + $0x1] ss:$0 sm:$0xff]  ;;  %v133_v11 = vld [vmem:[%s263_s4 + $0x8] sm:$0xff]  ;;  %v158_v12 = vld [vmem:[%s262_s3] ss:$0 sm:$0xff]  ;;  %s144_s7 = sshll.u32 %s196_s2, 4  ;;  %s145_s7 = int_to_ptr.vmem [resolvable:$true] %s144_s7 }
   0x6   :  { %167 = vmatpush3.msra.mxu0 %v23_v1  ;;  %vm136_vm1 = vcmask 261120   ;;  %v132_v15 = vld [vmem:[%s263_s4] sm:$0xff]  ;;  %s174_s10 = scalar_lea.vmem %s145_s7, 256  ;;  %p179_p1 = scmp.lt.s32.totalorder %s145_s7, %s145_s7 }
   0x7   :  { %169 = vmatmul.mubr.msk.f32.vlgmr.msra.gmra.mxu0 %vm32_vm0, %v22_v3  ;;  %p175_p0 = scmp.ne.s32.totalorder %s145_s7, %s174_s10  ;;  %p180_p2 = scmp.lt.s32.totalorder %s174_s10, %s174_s10 }
   0x9   :  { %p181_p3 = por %p180_p2, %p179_p1 }
   0xb   :  { %p182_p4 = pnand %p181_p3, %p175_p0 }
  0xc7   :  { %v170_v5 = vpop.f32.mrf.mxu0 }
  0xc8   :  { %v111_v6 = vadd.f32 %v170_v5, %v155_v4 }
  0xc9   :  { %v105_v8 = vpop.f32.mrf.mxu0 }
  0xca   :  { %v115_v9 = vmul.f32 5.656854, %v111_v6  ;;  %v106_v10 = vadd.f32 %v155_v4, %v105_v8 }
  0xcc   :  { %v131_v13 = vadd.f32 %v159_v7, %v115_v9  ;;  %v114_v14 = vmul.f32 5.656854, %v106_v10 }
  0xce   :  { %v135_v16 = vmul.f32 %v133_v11, %v131_v13  ;;  %v130_v17 = vadd.f32 %v158_v12, %v114_v14 }
  0xd0   :  { %138 = vst.msk [vmem:[#allocation2 + $0x8] sm:$0xff] %vm136_vm1, %v135_v16  ;;  %v134_v18 = vmul.f32 %v132_v15, %v130_v17 }
  0xd2   :  { %137 = vst.msk [vmem:[#allocation2] sm:$0xff] %vm136_vm1, %v134_v18 }
  0xd3   :  { %185 = shalt.err (!%p182_p4)
}
  0xd4   :  { %s197_s3 = smov 128   ;;  %s198_s11 = smov 8  }
  0xd5   :  { %150 = dma.vmem_to_hbm [thread:$0]  %s145_s7, 256, %s264_s5, [#allocation3], %s197_s3, %s197_s3, %s198_s11  }
  0xd6   :  { %194 = dma.done.wait [#allocation3], 256  }
  0xd7   :  { %195 = vsyncadd [#allocation3], 4294967040 }
  0xd8   :  { %154 = vsyncpa [#allocation3], 1 }

</bundles_post_ra>
